<compile_context>
chip_gen: v7x
topology: tpu7x:2x2x1
jax: 0.10.0
libtpu: 0.0.40
codegen_flags: <defaults>
</compile_context>

<pallas_src>
import functools
import math

import jax
import jax.numpy as jnp
from jax import lax
from jax.experimental import pallas as pl
from jax.experimental.pallas import tpu as pltpu


def _cdiv(a, b):
    return -(-a // b)


def _round_up(a, b):
    return _cdiv(a, b) * b


def _pick_row_tile(n_batch, qh, wp, co2, *, min_steps=8, acc_bytes=128 * 1024):
    """Row-tile height TQH (multiple of 8).

    Keeps the f32 accumulator (co2 x TQH*wp) below ~acc_bytes (vreg friendly,
    no spill churn) while preserving at least `min_steps` total grid steps
    (>= 4 per TensorCore on 2-TC chips) when the problem is big enough.
    """
    qh8 = _round_up(max(qh, 1), 8)
    max_tqh = max(8, ((acc_bytes // (4 * co2 * wp)) // 8) * 8)
    # TODO(synk): for very large s*s*C_out the accumulator cap cannot be met by
    # shrinking TQH alone; an output-channel grid dimension would be needed.
    tqh = 8
    while (tqh * 2 <= min(max_tqh, qh8)
           and n_batch * _cdiv(qh, tqh * 2) >= min_steps):
        tqh *= 2
    return tqh


def _ws_convt2d_phase_kernel(x_ref, w_ref, b_ref, o_ref, *,
                             n_sub, wp, tile_flat, win_flat, scale):
    """One (batch element, output-row tile) step, all s*s phases at once.

    x_ref: (C_in, win_flat)          flat row-tile window of the padded input
                                     (tile_flat positions + halo), lanes=positions
    w_ref: (n_sub*n_sub, C_in, CO2)  flipped sub-tap weights (unscaled),
                                     CO2 = s*s*C_out phase-folded channels
    b_ref: (CO2, 1)                  bias broadcast over the s*s phases
    o_ref: (CO2, tile_flat)          flat output tile
    """
    xw = x_ref[...]                                  # native dtype, no upcast
    co2 = o_ref.shape[0]

    acc = jnp.zeros((co2, tile_flat), jnp.float32)
    for mi in range(n_sub):                          # row sub-taps
        for li in range(n_sub):                      # col sub-taps
            off = mi * wp + li                       # static flat lane shift
            if off == 0:
                xs = xw[:, :tile_flat]
            else:
                # Lane rotation rides the XLU; the first tile_flat lanes equal
                # the window shifted left by `off` (no wrap contamination since
                # off + tile_flat <= win_flat by construction).
                xs = pltpu.roll(xw, shift=win_flat - off, axis=1)[:, :tile_flat]
            wt = w_ref[mi * n_sub + li] * scale      # fold scale into small taps
            acc = acc + lax.dot_general(
                wt, xs,
                dimension_numbers=(((0,), (0,)), ((), ())),
                preferred_element_type=jnp.float32)  # (CO2, tile_flat)

    o_ref[...] = (acc + b_ref[...].astype(jnp.float32)).astype(o_ref.dtype)


def ws_conv_transpose2d(x, weight, bias, *, stride, padding, gain=math.sqrt(2.0)):
    """Weight-scaled ConvTranspose2d forward (NCHW) as a Pallas TPU kernel."""
    n, c_in, h, w = x.shape
    wc_in, c_out, k, k2 = weight.shape
    assert wc_in == c_in and k == k2 and bias.shape == (c_out,)
    s = int(stride)
    p = int(padding)
    scale = float(gain) / math.sqrt(c_in * k * k)

    oh = (h - 1) * s - 2 * p + k
    ow = (w - 1) * s - 2 * p + k
    assert oh >= 1 and ow >= 1, "invalid conv_transpose geometry"

    # ---- phase (sub-pixel) decomposition geometry --------------------------
    m = _cdiv(k, s)                      # sub-taps per spatial dim
    n_taps = m * m
    co2 = s * s * c_out                  # phase-folded output channels
    q_lo = p // s                        # first phase-grid row/col index
    qh = (oh - 1 + p) // s - q_lo + 1    # phase-grid rows
    qw = (ow - 1 + p) // s - q_lo + 1    # phase-grid cols

    # Flat layout: positions on lanes with row stride wp (covers the m-1 column
    # halo, padded to a multiple of 16); TQH % 8 == 0 -> tile_flat % 128 == 0.
    wp = _round_up(qw + m - 1, 16)
    tqh = _pick_row_tile(n, qh, wp, co2)
    n_tiles = _cdiv(qh, tqh)
    qh_pad = n_tiles * tqh
    tile_flat = tqh * wp                 # output tile width (mult of 128)
    halo = _round_up(m * wp, 128)        # row/col tap halo, lane aligned
    win_flat = tile_flat + halo          # per-tile input window (mult of 128)
    x_rows = qh_pad + _cdiv(halo, wp)
    flat_len = x_rows * wp               # >= (n_tiles-1)*tile_flat + win_flat

    # ---- wrapper-side layout plumbing ---------------------------------------
    # Undilated, edge-padded input: x_ext[j] = x[j + q_lo - (m-1)] (rows & cols,
    # zeros outside; negative lo pads crop for large padding).
    pad_lo = (m - 1) - q_lo
    x_ext = lax.pad(
        x, jnp.zeros((), x.dtype),
        ((0, 0, 0), (0, 0, 0),
         (pad_lo, x_rows - h - pad_lo, 0),
         (pad_lo, wp - w - pad_lo, 0)))
    x_img = x_ext.reshape(n, c_in, flat_len)
    # Pre-windowed per-row-tile views (tile + halo): bounded, pipelined DMAs.
    x_win = jnp.stack(
        [x_img[:, :, t * tile_flat: t * tile_flat + win_flat]
         for t in range(n_tiles)], axis=1)                 # (N, T, C_in, win)
    x_win = x_win.reshape(n * n_tiles, c_in, win_flat)

    # Flipped sub-tap weights folded over phases: (n_taps, C_in, s*s*C_out).
    k_pad = s * m
    wz = lax.pad(weight, jnp.zeros((), weight.dtype),
                 ((0, 0, 0), (0, 0, 0), (0, k_pad - k, 0), (0, k_pad - k, 0)))
    wz = wz.reshape(c_in, c_out, m, s, m, s)    # kh = s*mh + r, kw = s*ml + c
    wz = wz[:, :, ::-1, :, ::-1, :]             # flip the (mh, ml) sub-taps
    w_taps = jnp.transpose(wz, (2, 4, 0, 3, 5, 1)).reshape(n_taps, c_in, co2)
    b2d = jnp.tile(bias, s * s).reshape(co2, 1)  # bias[(r*s + c)*C_out + co]

    kernel = functools.partial(_ws_convt2d_phase_kernel, n_sub=m, wp=wp,
                               tile_flat=tile_flat, win_flat=win_flat,
                               scale=scale)

    x_item = jnp.dtype(x.dtype).itemsize
    w_item = jnp.dtype(weight.dtype).itemsize
    flops = 2 * n * n_tiles * n_taps * c_in * co2 * tile_flat
    bytes_accessed = (n * n_tiles * c_in * win_flat * x_item
                      + n_taps * c_in * co2 * w_item + co2 * 4
                      + n * n_tiles * co2 * tile_flat * x_item)

    # Generation-aware VMEM limit (<= 60% of the detected per-core capacity).
    try:
        vmem_cap = int(getattr(pltpu.get_tpu_info(), "vmem_capacity_bytes",
                               64 * 1024 * 1024))
    except Exception:
        vmem_cap = 64 * 1024 * 1024      # conservative (v7x per-TC VMEM)
    vmem_need = (2 * c_in * win_flat * x_item          # double-buffered input
                 + 2 * co2 * tile_flat * x_item        # double-buffered output
                 + 2 * (n_taps * c_in * co2 * w_item + co2 * 4)
                 + co2 * tile_flat * 4                 # f32 accumulator
                 + (8 << 20))                          # Mosaic internal scratch
    vmem_limit = int(min(max(32 << 20, vmem_need), int(0.6 * vmem_cap)))

    out_flat = pl.pallas_call(
        kernel,
        out_shape=jax.ShapeDtypeStruct((n, co2, n_tiles * tile_flat), x.dtype),
        grid_spec=pltpu.PrefetchScalarGridSpec(
            num_scalar_prefetch=0,
            grid=(n, n_tiles),
            in_specs=[
                # per-(batch, row-tile) input window, pipelined by the BlockSpec
                pl.BlockSpec((pl.Squeezed(), c_in, win_flat),
                             lambda i, t: (i * n_tiles + t, 0, 0)),
                # sub-tap weights and bias, resident for the whole grid
                pl.BlockSpec((n_taps, c_in, co2), lambda i, t: (0, 0, 0)),
                pl.BlockSpec((co2, 1), lambda i, t: (0, 0)),
            ],
            out_specs=pl.BlockSpec((pl.Squeezed(), co2, tile_flat),
                                   lambda i, t: (i, 0, t)),
        ),
        compiler_params=pltpu.CompilerParams(
            dimension_semantics=("parallel", "parallel"),
            vmem_limit_bytes=vmem_limit,
        ),
        cost_estimate=pl.CostEstimate(flops=int(flops), transcendentals=0,
                                      bytes_accessed=int(bytes_accessed)),
    )(x_win, w_taps, b2d)

    # Phase interleave + crop (pure layout plumbing).
    y = out_flat.reshape(n, s, s, c_out, qh_pad, wp)[:, :, :, :, :qh, :qw]
    y = jnp.transpose(y, (0, 3, 4, 1, 5, 2)).reshape(n, c_out, qh * s, qw * s)
    off = p % s
    return y[:, :, off:off + oh, off:off + ow]


def _reference(x, weight, bias, *, stride, padding, gain=math.sqrt(2.0)):
    """Pure-JAX reference matching F.conv_transpose2d(x, weight*scale, bias)."""
    c_in, c_out, k, _ = weight.shape
    scale = float(gain) / math.sqrt(c_in * k * k)
    w_oihw = jnp.transpose(weight * scale, (1, 0, 2, 3))[:, :, ::-1, ::-1]
    a = k - 1 - padding
    out = lax.conv_general_dilated(
        x.astype(jnp.float32), w_oihw.astype(jnp.float32),
        window_strides=(1, 1),
        padding=((a, a), (a, a)),
        lhs_dilation=(stride, stride),
        rhs_dilation=(1, 1),
        dimension_numbers=("NCHW", "OIHW", "NCHW"),
        precision=lax.Precision.HIGHEST,
    )
    return (out + bias[None, :, None, None]).astype(x.dtype)


if __name__ == "__main__":
    key = jax.random.PRNGKey(0)
    k_x, k_w, k_b = jax.random.split(key, 3)

    # Small shapes consistent with the module: N=2, C_in=4 -> C_out=8,
    # 4x4 kernel, stride 2, padding 1, 16x16 input -> 32x32 output.
    n_b, c_in, c_out, ksz, stride, padding = 2, 4, 8, 4, 2, 1
    h = w = 16

    x = jax.random.normal(k_x, (n_b, c_in, h, w), dtype=jnp.float32)
    weight = jax.random.normal(k_w, (c_in, c_out, ksz, ksz), dtype=jnp.float32)
    bias = 0.1 * jax.random.normal(k_b, (c_out,), dtype=jnp.float32)

    out = ws_conv_transpose2d(x, weight, bias, stride=stride, padding=padding)
    out = jax.block_until_ready(out)

    ref = _reference(x, weight, bias, stride=stride, padding=padding)
    oh = (h - 1) * stride - 2 * padding + ksz
    assert out.shape == (n_b, c_out, oh, oh) and out.dtype == x.dtype
    max_err = jnp.max(jnp.abs(out - ref))
    assert jnp.allclose(out, ref, atol=1e-2, rtol=1e-2), (
        f"mismatch vs reference: max|err|={max_err}")

    print("KERNEL_OK")
</pallas_src>

<mosaic_0001>
module attributes {stable_mosaic.version = 11 : i64} {
  func.func @_ws_convt2d_phase_kernel(%arg0: i32, %arg1: i32, %arg2: memref<1x4x384xf32, #tpu.memory_space<vmem>>, %arg3: memref<4x4x32xf32, #tpu.memory_space<vmem>>, %arg4: memref<32x1xf32, #tpu.memory_space<vmem>>, %arg5: memref<1x32x256xf32, #tpu.memory_space<vmem>>) attributes {dimension_semantics = [#tpu.dimension_semantics<parallel>, #tpu.dimension_semantics<parallel>], iteration_bounds = array<i64: 2, 3>, scalar_prefetch = 0 : i64, scratch_operands = 0 : i64, tpu.core_type = #tpu.core_type<tc>, window_params = [{transform_indices = @transform_0, window_bounds = array<i64: 1, 4, 384>}, {pipeline_mode = #tpu.pipeline_mode<synchronous>, transform_indices = @transform_1, window_bounds = array<i64: 4, 4, 32>}, {pipeline_mode = #tpu.pipeline_mode<synchronous>, transform_indices = @transform_2, window_bounds = array<i64: 32, 1>}, {transform_indices = @transform_3, window_bounds = array<i64: 1, 32, 256>}]} {
    %c0 = arith.constant 0 : index
    %c0_0 = arith.constant 0 : index
    %c0_1 = arith.constant 0 : index
    %0 = vector.load %arg2[%c0, %c0_0, %c0_1] : memref<1x4x384xf32, #tpu.memory_space<vmem>>, vector<1x4x384xf32>
    %1 = vector.shape_cast %0 : vector<1x4x384xf32> to vector<4x384xf32>
    %cst = arith.constant 0.000000e+00 : f32
    %2 = vector.broadcast %cst : f32 to vector<32x256xf32>
    %3 = vector.extract_strided_slice %1 {offsets = [0, 0], sizes = [4, 256], strides = [1, 1]} : vector<4x384xf32> to vector<4x256xf32>
    %c0_2 = arith.constant 0 : index
    %c0_3 = arith.constant 0 : index
    %c0_4 = arith.constant 0 : index
    %4 = vector.load %arg3[%c0_2, %c0_3, %c0_4] : memref<4x4x32xf32, #tpu.memory_space<vmem>>, vector<1x4x32xf32>
    %5 = vector.shape_cast %4 : vector<1x4x32xf32> to vector<4x32xf32>
    %cst_5 = arith.constant 0.176776692 : f32
    %6 = vector.broadcast %cst_5 : f32 to vector<4x32xf32>
    %7 = arith.mulf %5, %6 : vector<4x32xf32>
    %cst_6 = arith.constant dense<0.000000e+00> : vector<32x256xf32>
    %8 = tpu.matmul %7, %3, %cst_6 {dimension_numbers = #tpu.dot_dimension_numbers<[0], [0], [1], [1], [0, 1, 1, 1], [], []>} : vector<4x32xf32>, vector<4x256xf32>, vector<32x256xf32> -> vector<32x256xf32>
    %9 = arith.addf %2, %8 : vector<32x256xf32>
    %c383_i32 = arith.constant 383 : i32
    %10 = tpu.dynamic_rotate %1 by %c383_i32 dim 1 : vector<4x384xf32>, i32 -> vector<4x384xf32>
    %11 = vector.extract_strided_slice %10 {offsets = [0, 0], sizes = [4, 256], strides = [1, 1]} : vector<4x384xf32> to vector<4x256xf32>
    %c1 = arith.constant 1 : index
    %c0_7 = arith.constant 0 : index
    %c0_8 = arith.constant 0 : index
    %12 = vector.load %arg3[%c1, %c0_7, %c0_8] : memref<4x4x32xf32, #tpu.memory_space<vmem>>, vector<1x4x32xf32>
    %13 = vector.shape_cast %12 : vector<1x4x32xf32> to vector<4x32xf32>
    %cst_9 = arith.constant 0.176776692 : f32
    %14 = vector.broadcast %cst_9 : f32 to vector<4x32xf32>
    %15 = arith.mulf %13, %14 : vector<4x32xf32>
    %cst_10 = arith.constant dense<0.000000e+00> : vector<32x256xf32>
    %16 = tpu.matmul %15, %11, %cst_10 {dimension_numbers = #tpu.dot_dimension_numbers<[0], [0], [1], [1], [0, 1, 1, 1], [], []>} : vector<4x32xf32>, vector<4x256xf32>, vector<32x256xf32> -> vector<32x256xf32>
    %17 = arith.addf %9, %16 : vector<32x256xf32>
    %c352_i32 = arith.constant 352 : i32
    %18 = tpu.dynamic_rotate %1 by %c352_i32 dim 1 : vector<4x384xf32>, i32 -> vector<4x384xf32>
    %19 = vector.extract_strided_slice %18 {offsets = [0, 0], sizes = [4, 256], strides = [1, 1]} : vector<4x384xf32> to vector<4x256xf32>
    %c2 = arith.constant 2 : index
    %c0_11 = arith.constant 0 : index
    %c0_12 = arith.constant 0 : index
    %20 = vector.load %arg3[%c2, %c0_11, %c0_12] : memref<4x4x32xf32, #tpu.memory_space<vmem>>, vector<1x4x32xf32>
    %21 = vector.shape_cast %20 : vector<1x4x32xf32> to vector<4x32xf32>
    %cst_13 = arith.constant 0.176776692 : f32
    %22 = vector.broadcast %cst_13 : f32 to vector<4x32xf32>
    %23 = arith.mulf %21, %22 : vector<4x32xf32>
    %cst_14 = arith.constant dense<0.000000e+00> : vector<32x256xf32>
    %24 = tpu.matmul %23, %19, %cst_14 {dimension_numbers = #tpu.dot_dimension_numbers<[0], [0], [1], [1], [0, 1, 1, 1], [], []>} : vector<4x32xf32>, vector<4x256xf32>, vector<32x256xf32> -> vector<32x256xf32>
    %25 = arith.addf %17, %24 : vector<32x256xf32>
    %c351_i32 = arith.constant 351 : i32
    %26 = tpu.dynamic_rotate %1 by %c351_i32 dim 1 : vector<4x384xf32>, i32 -> vector<4x384xf32>
    %27 = vector.extract_strided_slice %26 {offsets = [0, 0], sizes = [4, 256], strides = [1, 1]} : vector<4x384xf32> to vector<4x256xf32>
    %c3 = arith.constant 3 : index
    %c0_15 = arith.constant 0 : index
    %c0_16 = arith.constant 0 : index
    %28 = vector.load %arg3[%c3, %c0_15, %c0_16] : memref<4x4x32xf32, #tpu.memory_space<vmem>>, vector<1x4x32xf32>
    %29 = vector.shape_cast %28 : vector<1x4x32xf32> to vector<4x32xf32>
    %cst_17 = arith.constant 0.176776692 : f32
    %30 = vector.broadcast %cst_17 : f32 to vector<4x32xf32>
    %31 = arith.mulf %29, %30 : vector<4x32xf32>
    %cst_18 = arith.constant dense<0.000000e+00> : vector<32x256xf32>
    %32 = tpu.matmul %31, %27, %cst_18 {dimension_numbers = #tpu.dot_dimension_numbers<[0], [0], [1], [1], [0, 1, 1, 1], [], []>} : vector<4x32xf32>, vector<4x256xf32>, vector<32x256xf32> -> vector<32x256xf32>
    %33 = arith.addf %25, %32 : vector<32x256xf32>
    %c0_19 = arith.constant 0 : index
    %c0_20 = arith.constant 0 : index
    %34 = vector.load %arg4[%c0_19, %c0_20] : memref<32x1xf32, #tpu.memory_space<vmem>>, vector<32x1xf32>
    %35 = vector.broadcast %34 : vector<32x1xf32> to vector<32x256xf32>
    %36 = arith.addf %33, %35 : vector<32x256xf32>
    %c0_21 = arith.constant 0 : index
    %c0_22 = arith.constant 0 : index
    %c0_23 = arith.constant 0 : index
    %37 = vector.load %arg5[%c0_21, %c0_22, %c0_23] : memref<1x32x256xf32, #tpu.memory_space<vmem>>, vector<1x32x256xf32>
    %38 = vector.shape_cast %37 : vector<1x32x256xf32> to vector<32x256xf32>
    %39 = vector.shape_cast %36 : vector<32x256xf32> to vector<1x32x256xf32>
    tpu.vector_store %arg5[%c0_21, %c0_22, %c0_23], %39 {strides = array<i32>} : memref<1x32x256xf32, #tpu.memory_space<vmem>>, vector<1x32x256xf32>,
    return
  }
  func.func @transform_0(%arg0: i32, %arg1: i32) -> (i32, i32, i32) {
    %c3_i32 = arith.constant 3 : i32
    %0 = arith.muli %arg0, %c3_i32 : i32
    %1 = arith.addi %0, %arg1 : i32
    %c0_i32 = arith.constant 0 : i32
    %c0_i32_0 = arith.constant 0 : i32
    %c0_i32_1 = arith.constant 0 : i32
    return %1, %c0_i32, %c0_i32_0 : i32, i32, i32
  }
  func.func @transform_1(%arg0: i32, %arg1: i32) -> (i32, i32, i32) {
    %c0_i32 = arith.constant 0 : i32
    %c0_i32_0 = arith.constant 0 : i32
    %c0_i32_1 = arith.constant 0 : i32
    %c0_i32_2 = arith.constant 0 : i32
    return %c0_i32, %c0_i32_0, %c0_i32_1 : i32, i32, i32
  }
  func.func @transform_2(%arg0: i32, %arg1: i32) -> (i32, i32) {
    %c0_i32 = arith.constant 0 : i32
    %c0_i32_0 = arith.constant 0 : i32
    %c0_i32_1 = arith.constant 0 : i32
    return %c0_i32, %c0_i32_0 : i32, i32
  }
  func.func @transform_3(%arg0: i32, %arg1: i32) -> (i32, i32, i32) {
    %c0_i32 = arith.constant 0 : i32
    %c0_i32_0 = arith.constant 0 : i32
    return %arg0, %c0_i32, %arg1 : i32, i32, i32
  }
}

</mosaic_0001>

<bundles_post_ra>
// kernel: tpu_custom_call.1
= control target key start
LH: loop header
LB: loop body
LE: loop exit
PB: predicated region body
PF: predicated region fallthrough
CT: control target
= control target key end

     0   :  { %8 = vsyncpa [#allocation3], 0  ;;  %s1653_s0 = inlined_call_operand.hbm [shape: f32[6,4,384], index: 0, kind: input, shape index: {}]   ;;  %s1654_s1 = inlined_call_operand.vmem [shape: f32[4,4,32], index: 1, kind: input, shape index: {}]   ;;  %s1655_s2 = inlined_call_operand.vmem [shape: f32[32,1], index: 2, kind: input, shape index: {}]   ;;  %s1656_s3 = inlined_call_operand.hbm [shape: f32[2,32,768], index: 3, kind: output, shape index: {}]  }
   0x1   :  { %10 = vsyncpa [#allocation3 + $0x1], 0 }
   0x2   :  { %11 = vsyncpa [#allocation4], 0 }
   0x3   :  { %13 = vsyncpa [#allocation4 + $0x1], 0  ;;  %s1336_s12 = smov 0   ;;  %s1338_s13 = smov 0  }
   0x4   :  { %s1340_s14 = smov 0   ;;  %s1342_s15 = smov 0  }
   0x5   :  { %s1344_s16 = smov 0   ;;  %s1346_s17 = smov 0  }
   0x6   :  { %s1348_s18 = smov 0   ;;  %s1350_s19 = smov 0  }
   0x7   :  { %s1352_s20 = smov 0   ;;  %s1354_s21 = smov 0  }
   0x8   :  { %s1356_s22 = smov 0  }
   0x9 LB: > { %1661 = sst [smem:[#allocation8_spill]] %s1300_s21  ;;  %s972_s23 = sadd.s32 4294967295, %s1304_s22   ;;  %s1304_s22 = sphi %s1356_s22, %s19_s22   ;;  %s1300_s21 = sphi %s1354_s21, %s1676_s21   ;;  %s1296_s20 = sphi %s1352_s20, %s1684_s20   ;;  %s1292_s19 = sphi %s1350_s19, %s1674_s19   ;;  %s1288_s18 = sphi %s1348_s18, %s1683_s18   ;;  %s1284_s17 = sphi %s1346_s17, %s1682_s17   ;;  %s1280_s16 = sphi %s1344_s16, %s1681_s16   ;;  %s1276_s15 = sphi %s1342_s15, %s1680_s15   ;;  %s1272_s14 = sphi %s1340_s14, %s1679_s14   ;;  %s1268_s13 = sphi %s1338_s13, %s1678_s13   ;;  %s1264_s12 = sphi %s1336_s12, %s1677_s12  }
   0xa   : > { %s28_s25 = sadd.s32 1, %s1296_s20  ;;  %s31_s26 = sadd.s32 1, %s1300_s21 }
   0xb   : > { %p29_p0 = scmp.ge.s32.totalorder %s28_s25, 3  ;;  %s35_s27 = smul.u32 3, %s1300_s21 }
   0xc   : > { %s42_s28 = sadd.s32 1, %s1284_s17  ;;  %p49_p1 = scmp.ne.s32.totalorder %s1284_s17, %s1280_s16 }
   0xd   : > { %s1686_s25 = smov (%p29_p0, %s28_s25), 0  ;;  %s1688_s26 = smov (!%p29_p0, %s31_s26), %s1300_s21 }
   0xe   : > { %1662 = sst [smem:[#allocation9_spill]] %s1686_s25  ;;  %s1401_s29 = sadd.s32 %s1296_s20, %s35_s27 }
   0xf   : > { %p50_p2 = scmp.eq.s32.totalorder %s1304_s22, 0  ;;  %p33_p3 = scmp.ge.s32.totalorder %s1688_s26, 2 }
  0x10   : > { %p55_p4 = scmp.ne.s32.totalorder %s1280_s16, %s1276_s15  ;;  %p56_p6 = scmp.eq.s32.totalorder %s972_s23, 0 }
  0x11   : > { %p1405_p5 = por %p50_p2, %p49_p1  ;;  %s1690_s26 = smov (%p33_p3, %s1688_s26), 0 }
  0x12   : > { %1664 = sst [smem:[#allocation10_spill]] %s1690_s26  ;;  %p1411_p7 = por %p56_p6, %p55_p4 }
  0x13   : > { %s108_s5 = ssub.s32 %s1296_s20, %s1686_s25  ;;  %s37_s6 = smul.u32 3, %s1690_s26 }
  0x14   : > { %s107_s7 = ssub.s32 %s1300_s21, %s1690_s26  ;;  %s112_s9 = sadd.s32 1, %s1272_s14 }
  0x15   : > { %s109_s8 = sor.u32 %s108_s5, %s107_s7  ;;  %s38_s10 = sadd.s32 %s37_s6, %s1686_s25 }
  0x16   : > { %p110_p8 = scmp.eq.s32.totalorder %s109_s8, 0  ;;  %s39_s11 = ssub.s32 %s1401_s29, %s38_s10 }
  0x17   : > { %p122_p9 = scmp.ne.s32.totalorder %s1272_s14, %s1268_s13  ;;  %p40_p10 = scmp.eq.s32.totalorder %s39_s11, 0 }
  0x18   : > { %p123_p11 = scmp.eq.s32.totalorder %s972_s23, 5  ;;  %p128_p13 = scmp.ne.s32.totalorder %s1268_s13, %s1264_s12 }
  0x19   : > { %s1426_s15 = scalar_select %p110_p8, %s1272_s14, %s112_s9  }
  0x1a   : > { %s1429_s27 = scalar_select %p40_p10, %s1284_s17, %s42_s28  }
  0x1b   : > { %p1431_p12 = por %p123_p11, %p122_p9  ;;  %s1667_s5 = sadd.s32 4294967294, %s1304_s22  }
  0x1c   : > { %p129_p0 = scmp.eq.s32.totalorder %s1667_s5, 5  ;;  %p1051_p1 = scmp.lt.s32.totalorder %s1304_s22, 6 }
  0x1d   : > { %s1666_s24 = scalar_select %p1431_p12, 1, 0 }
  0x1e   : > { %s155_s6 = sand.u32 1, %s1284_s17   ;;  %p1441_p2 = por %p129_p0, %p128_p13 }
  0x1f   : > { %s1035_s8 = smul.u32 12, %s155_s6  ;;  %p1447_p3 = pnand %p1051_p1, %p1405_p5 }
  0x20   : > { %s1668_s7 = scalar_select %p1441_p2, 1, 0 }
  0x21   : > { %s1036_s28 = smul.u32 192, %s1401_s29  ;;  %s159_s5 = scalar_lea.vmem [#allocation2], %s1035_s8 }
  0x22   : > { %s169_s26 = sshll.u32 %s159_s5, 4  ;;  %s156_s30 = scalar_lea.sflag [#allocation3], %s155_s6  ;;  %s1458_s26 = int_to_ptr.vmem [resolvable:$true] %s169_s26 }
  0x23   : > { %s1456_s11 = scalar_lea.hbm %s1653_s0, %s1036_s28  ;;  %p1154_p8 = pneg %p1447_p3 }
  0x24   : > { %s1152_s25 = scalar_lea.hbm %s1456_s11, 192  ;;  %s1157_s9 = scalar_lea.hbm %s1653_s0, 1152 }
  0x25   : > { %p1153_p6 = scmp.ne.s32.totalorder %s1456_s11, %s1152_s25  ;;  %p1158_p11 = scmp.lt.u32.totalorder %s1456_s11, %s1653_s0 }
  0x26   : > { %p1159_p13 = scmp.lt.u32.totalorder %s1157_s9, %s1152_s25  ;;  %p1161_p1 = scmp.lt.u32.totalorder %s1152_s25, %s1456_s11 }
  0x27   : > { %p1155_p9 = pnand %p1154_p8, %p1153_p6 }
  0x28   : > { %p1160_p0 = por %p1159_p13, %p1158_p11 }
  0x29   : > { %p1156_p10 = pneg %p1155_p9 }
  0x2a   : > { %p1162_p4 = por %p1161_p1, %p1160_p0 }
  0x2c   : > { %p1163_p5 = pnand %p1162_p4, %p1156_p10 }
  0x2e   : > { %1166 = shalt.err (!%p1163_p5)
}
  0x2f   : > { %s1167_s6 = scalar_lea.vmem %s1458_s26, 192  ;;  %s1306_s8 = smov [#allocation2]  }
  0x30   : > { %p1168_p6 = scmp.ne.s32.totalorder %s1458_s26, %s1167_s6  ;;  %s1172_s5 = sshll.u32 %s1306_s8, 4  ;;  %s1173_s5 = int_to_ptr.vmem [resolvable:$false] %s1172_s5 }
  0x31   : > { %s1174_s21 = scalar_lea.vmem %s1173_s5, 384  ;;  %p1175_p12 = scmp.lt.s32.totalorder %s1458_s26, %s1173_s5 }
  0x32   : > { %p1170_p9 = pnand %p1168_p6, %p1154_p8  ;;  %p1176_p11 = scmp.lt.s32.totalorder %s1174_s21, %s1167_s6 }
  0x34   : > { %p1171_p2 = pneg %p1170_p9  ;;  %p1177_p13 = por %p1176_p11, %p1175_p12 }
  0x36   : > { %p1178_p0 = pnand %p1177_p13, %p1171_p2 }
  0x38   : > { %1181 = shalt.err (!%p1178_p0)
}
  0x39   : > { %1046 = dma.hbm_to_vmem [thread:$0]  (!%p1447_p3), %s1456_s11, 192, %s1458_s26, %s156_s30  }
  0x3a   : > { %p1670_p4 = scmp.lt.s32.totalorder %s1304_s22, 7  ;;  %p1671_p5 = scmp.ge.s32.totalorder %s1304_s22, 1 }
  0x3c   : > { %p175_p8 = pnand %p1671_p5, %p1670_p4 }
  0x3d   : > { %s180_s25 = sand.u32 (!%p175_p8), 1, %s1280_s16  }
  0x3e   : > { %178 = sbr.rel (%p175_p8) target bundleno = 514 (0x202), region = 32  ;;  %s181_s28 = scalar_lea.sflag (!%p175_p8), [#allocation3], %s180_s25 }
  0x3f   : > { %s1037_s29 = smul.u32 (!%p175_p8), 12, %s180_s25 }
  0x41   : > { %s184_s9 = scalar_lea.vmem (!%p175_p8), [#allocation2], %s1037_s29 }
  0x45   : > { %1255 = dma.done.wait (%p1411_p7), %s181_s28, 192  }
  0x46   : > { %1257 = vsyncadd (%p1411_p7), %s181_s28, 4294967104  ;;  %v211_v0 = vld [vmem:[%s184_s9 + $0x8] sm:$0xf]  ;;  %s1307_s23 = smov 96   ;;  %s1308_s10 = smov 127   ;;  %v1495_v1 = vld [vmem:[%s184_s9] sm:$0xff]  ;;  %v223_v16 = vlaneseq }
  0x47   : > { %513 = vrot.lane.b32.xlu1 %v211_v0, %s1307_s23  ;;  %221 = vrot.lane.b32.xlu0 %v211_v0, %s1308_s10  ;;  %v215_v2 = vcombine.high %v1495_v1, %v1495_v1  ;;  %v1309_v3 = vmov 0.0   ;;  %s1310_s26 = smov 95   ;;  %v992_v4 = vld [vmem:[%s1654_s1 + $0x8] sm:$0xf]  ;;  %v979_v6 = vld [vmem:[%s1654_s1 + $0x4] sm:$0xf] }
  0x48   : > { %635 = vmatprep.mubr.f32.mxu0 %v1309_v3  ;;  %347 = vmatprep.mubr.f32.mxu1 %v1309_v3  ;;  %v520_v5 = vmul.f32 0.17677669, %v992_v4  ;;  %v230_v7 = vmul.f32 0.17677669, %v979_v6  ;;  %v212_v8 = vld [vmem:[%s1654_s1] sm:$0xf] }
  0x49   : > { %v213_v9 = vmul.f32 0.17677669, %v212_v8  ;;  %v999_v10 = vld [vmem:[%s1654_s1 + $0xc] sm:$0xf]  ;;  %v1311_v12 = vmov 0   ;;  %v827_v14 = vld [vmem:[%s1655_s2] sm:$0xff] }
  0x4a   : > { %v679_v11 = vmul.f32 0.17677669, %v999_v10  ;;  %v828_v13 = vld [vmem:[%s1655_s2 + $0x8] sm:$0xff]  ;;  %v829_v15 = vld [vmem:[%s1655_s2 + $0x10] sm:$0xff]  ;;  %v830_v17 = vld [vmem:[%s1655_s2 + $0x18] sm:$0xff]  ;;  %v224_v20 = vand.u32 127, %v223_v16 }
  0x4b   : > { %509 = vrot.lane.b32.xlu1 %v1495_v1, %s1307_s23  ;;  %217 = vrot.lane.b32.xlu0 %v1495_v1, %s1308_s10  ;;  %vm276_vm2 = vcmask 1043456   ;;  %vm263_vm4 = vcmask 31744   ;;  %s204_s30 = sand.u32 1, %s1268_s13   ;;  %s1038_s5 = smul.u32 24, %s1292_s19 }
  0x4c   : > { %vm225_vm0 = vcmp.lt.s32.totalorder %v224_v20, 127  ;;  %vm515_vm1 = vcmp.lt.s32.totalorder %v224_v20, 96  ;;  %vm674_vm3 = vcmp.lt.s32.totalorder %v224_v20, 95  ;;  %s978_s6 = sshll.u32 %s204_s30, 6  ;;  %s1007_s21 = sshll.u32 %s1288_s18, 1 }
  0x4d   : > { %s1570_s8 = scalar_lea.vmem [#allocation5], %s978_s6  ;;  %s880_s25 = sadd.s32 %s1038_s5, %s1007_s21 }
  0x4e   : > { %s883_s29 = sshll.u32 %s1570_s8, 4  ;;  %s1008_s18 = sshll.u32 %s880_s25, 7  ;;  %s1580_s29 = int_to_ptr.vmem [resolvable:$true] %s883_s29 }
  0x4f   : > { %511 = vrot.lane.b32.xlu1 %v215_v2, %s1307_s23  ;;  %219 = vrot.lane.b32.xlu0 %v215_v2, %s1308_s10  ;;  %s1586_s9 = scalar_lea.hbm %s1656_s3, %s1008_s18  ;;  %s1592_s23 = scalar_lea.sflag [#allocation4], %s204_s30 }
  0x50   : > { %s1182_s10 = scalar_lea.vmem %s1580_s29, 1024  ;;  %p1672_p12 = scmp.ne.s32.totalorder %s1666_s24, 0 }
  0x51   : > { %p1183_p7 = scmp.ne.s32.totalorder %s1580_s29, %s1182_s10 }
  0x53   : > { %672 = vrot.lane.b32.xlu1 %v211_v0, %s1310_s26  ;;  %670 = vrot.lane.b32.xlu0 %v215_v2, %s1310_s26  ;;  %p1184_p2 = pnand %p1183_p7, %p1672_p12 }
  0x55   : > { %p1185_p3 = pneg %p1184_p2 }
  0x57   : > { %668 = vrot.lane.b32.xlu0 %v1495_v1, %s1310_s26  ;;  %s1312_s26 = smov [#allocation5]  }
  0x58   : > { %s1186_s4 = sshll.u32 %s1312_s26, 4  ;;  %s1187_s4 = int_to_ptr.vmem [resolvable:$false] %s1186_s4 }
  0x59   : > { %s1188_s11 = scalar_lea.vmem %s1187_s4, 2048  ;;  %p1189_p10 = scmp.lt.s32.totalorder %s1580_s29, %s1187_s4 }
  0x5a   : > { %p1190_p1 = scmp.lt.s32.totalorder %s1188_s11, %s1182_s10 }
  0x5c   : > { %p1191_p6 = por %p1190_p1, %p1189_p10 }
  0x5e   : > { %p1192_p9 = pnand %p1191_p6, %p1185_p3 }
  0x75   : > { %521 = vxpose.xlu0.b32.start.end [1/1] (short) (narrow) %v520_v5, 32 }
  0x7c   : > { %231 = vxpose.xlu1.b32.start.end [1/1] (short) (narrow) %v230_v7, 32 }
  0x82   : > { %372 = vxpose.xlu0.b32.start.end [1/1] (short) (narrow) %v213_v9, 32 }
  0x89   : > { %680 = vxpose.xlu1.b32.start.end [1/1] (short) (narrow) %v679_v11, 32 }
  0xa7   : > { %1150 = vset.pattern.permute.xlu1 %v1311_v12 }
  0xab   : > { %1149 = vset.pattern.permute.xlu0 %v1311_v12 }
  0xb3   : > { %838 = vperm.xlu1 %1150, %v828_v13  }
  0xb7   : > { %833 = vperm.xlu0 %1149, %v827_v14   ;;  %843 = vperm.xlu1 %1150, %v829_v15  }
  0xb9   : > { %v514_v18 = vpop.permute.xlu1 %513  ;;  %v222_v19 = vpop.permute.xlu0 %221 }
  0xbb   : > { %848 = vperm.xlu0 %1149, %v830_v17  }
  0xbd   : > { %v510_v21 = vpop.permute.xlu1 %509  ;;  %v218_v22 = vpop.permute.xlu0 %217 }
  0xc1   : > { %v512_v23 = vpop.permute.xlu1 %511  ;;  %v220_v24 = vpop.permute.xlu0 %219 }
  0xc2   : > { %v226_v25 = vsel %vm225_vm0, %v220_v24, %v222_v19  ;;  %v516_v26 = vsel %vm515_vm1, %v512_v23, %v514_v18  ;;  %v517_v27 = vsel %vm515_vm1, %v510_v21, %v512_v23  ;;  %v227_v28 = vsel %vm225_vm0, %v218_v22, %v220_v24 }
  0xc3   : > { %980 = vmatprep.subr.msk.mxu1 %vm276_vm2, %v226_v25  ;;  %993 = vmatprep.subr.msk.mxu0 %vm276_vm2, %v516_v26 }
  0xc4   : > { %994 = vmatpush1.msk.msra.mxu0 %vm276_vm2, %v517_v27  ;;  %981 = vmatpush1.msk.msra.mxu1 %vm276_vm2, %v227_v28 }
  0xc5   : > { %v673_v29 = vpop.permute.xlu1 %672  ;;  %v671_v30 = vpop.permute.xlu0 %670  ;;  %986 = vmatprep.subr.msk.mxu1 %vm276_vm2, %v215_v2 }
  0xc6   : > { %v675_v31 = vsel %vm674_vm3, %v671_v30, %v673_v29 }
  0xc7   : > { %1000 = vmatprep.subr.msk.mxu0 %vm276_vm2, %v675_v31 }
  0xc9   : > { %v669_v32 = vpop.permute.xlu0 %668 }
  0xca   : > { %v676_v34 = vsel %vm674_vm3, %v669_v32, %v671_v30 }
  0xf5   : > { %v537_v33 = vpop.trf.xlu0 }
  0xf6   : > { %995 = vmatmul.mubr.msk.f32.vlgmr.msra.gmra.mrb[0].mxu0 %vm263_vm4, %v537_v33 }
  0xf7   : > { %1001 = vmatpush1.msk.msra.mxu0 %vm276_vm2, %v676_v34  ;;  %641 = vmatprep.mubr.f32.mxu0 %v1309_v3 }
  0xf9   : > { %v538_v35 = vpop.trf.xlu0 }
  0xfa   : > { %996 = vmatmul.mubr.msk.f32.gmra.mrb[2].mxu0 %vm263_vm4, %v538_v35 }
  0xfb   : > { %647 = vmatprep.mubr.f32.mxu0 %v1309_v3 }
  0xfc   : > { %v247_v36 = vpop.trf.xlu1 }
  0xfd   : > { %982 = vmatmul.mubr.msk.f32.vlgmr.msra.gmra.mrb[0].mxu1 %vm263_vm4, %v247_v36  ;;  %v539_v37 = vpop.trf.xlu0 }
  0xfe   : > { %987 = vmatpush1.msk.msra.mxu1 %vm276_vm2, %v1495_v1  ;;  %353 = vmatprep.mubr.f32.mxu1 %v1309_v3 }
  0xff   : > { %997 = vmatmul.mubr.msk.f32.gmra.mrb[4].mxu0 %vm263_vm4, %v539_v37 }
 0x100   : > { %v248_v38 = vpop.trf.xlu1  ;;  %653 = vmatprep.mubr.f32.mxu0 %v1309_v3 }
 0x101   : > { %983 = vmatmul.mubr.msk.f32.gmra.mrb[2].mxu1 %vm263_vm4, %v248_v38  ;;  %v540_v39 = vpop.trf.xlu0 }
 0x102   : > { %359 = vmatprep.mubr.f32.mxu1 %v1309_v3 }
 0x103   : > { %998 = vmatmul.mubr.msk.f32.gmra.mrb[6].mxu0 %vm263_vm4, %v540_v39 }
 0x104   : > { %v249_v40 = vpop.trf.xlu1  ;;  %794 = vmatprep.mubr.f32.mxu0 %v1309_v3 }
 0x105   : > { %984 = vmatmul.mubr.msk.f32.gmra.mrb[4].mxu1 %vm263_vm4, %v249_v40  ;;  %v388_v41 = vpop.trf.xlu0 }
 0x106   : > { %365 = vmatprep.mubr.f32.mxu1 %v1309_v3 }
 0x108   : > { %v250_v42 = vpop.trf.xlu1 }
 0x109   : > { %985 = vmatmul.mubr.msk.f32.gmra.mrb[6].mxu1 %vm263_vm4, %v250_v42  ;;  %v389_v43 = vpop.trf.xlu0 }
 0x10a   : > { %484 = vmatprep.mubr.f32.mxu1 %v1309_v3 }
 0x10c   : > { %v696_v44 = vpop.trf.xlu1 }
 0x10d   : > { %988 = vmatmul.mubr.msk.f32.vlgmr.msra.gmra.mrb[0].mxu1 %vm263_vm4, %v388_v41  ;;  %1002 = vmatmul.mubr.msk.f32.vlgmr.msra.gmra.mrb[0].mxu0 %vm263_vm4, %v696_v44  ;;  %v390_v46 = vpop.trf.xlu0 }
 0x10e   : > { %490 = vmatprep.mubr.f32.mxu1 %v1309_v3  ;;  %800 = vmatprep.mubr.f32.mxu0 %v1309_v3 }
 0x110   : > { %v697_v45 = vpop.trf.xlu1 }
 0x111   : > { %989 = vmatmul.mubr.msk.f32.gmra.mrb[2].mxu1 %vm263_vm4, %v389_v43  ;;  %1003 = vmatmul.mubr.msk.f32.gmra.mrb[2].mxu0 %vm263_vm4, %v697_v45  ;;  %v391_v48 = vpop.trf.xlu0 }
 0x112   : > { %496 = vmatprep.mubr.f32.mxu1 %v1309_v3  ;;  %806 = vmatprep.mubr.f32.mxu0 %v1309_v3 }
 0x114   : > { %v698_v47 = vpop.trf.xlu1 }
 0x115   : > { %990 = vmatmul.mubr.msk.f32.gmra.mrb[4].mxu1 %vm263_vm4, %v390_v46  ;;  %1004 = vmatmul.mubr.msk.f32.gmra.mrb[4].mxu0 %vm263_vm4, %v698_v47 }
 0x116   : > { %502 = vmatprep.mubr.f32.mxu1 %v1309_v3  ;;  %812 = vmatprep.mubr.f32.mxu0 %v1309_v3 }
 0x118   : > { %v699_v49 = vpop.trf.xlu1 }
 0x119   : > { %991 = vmatmul.mubr.msk.f32.gmra.mrb[6].mxu1 %vm263_vm4, %v391_v48  ;;  %1005 = vmatmul.mubr.msk.f32.gmra.mrb[6].mxu0 %vm263_vm4, %v699_v49 }
 0x132   : > { %v839_v51 = vpop.permute.xlu1 %838 }
 0x136   : > { %v834_v50 = vpop.permute.xlu0 %833  ;;  %v844_v3 = vpop.permute.xlu1 %843 }
 0x13a   : > { %v849_v18 = vpop.permute.xlu0 %848 }
 0x1e0   : > { %v486_v52 = vpop.f32.mrb[0].mxu1  ;;  %v796_v53 = vpop.f32.mrb[0].mxu0 }
 0x1e1   : > { %v1011_v54 = vadd.f32 %v796_v53, %v486_v52  ;;  %v488_v55 = vpop.f32.mrb[1].mxu1  ;;  %v798_v56 = vpop.f32.mrb[1].mxu0 }
 0x1e2   : > { %v1012_v57 = vadd.f32 %v798_v56, %v488_v55 }
 0x1e3   : > { %v851_v58 = vadd.f32 %v1011_v54, %v834_v50 }
 0x1e4   : > { %v852_v59 = vadd.f32 %v1012_v57, %v834_v50  ;;  %v492_v60 = vpop.f32.mrb[2].mxu1  ;;  %v802_v61 = vpop.f32.mrb[2].mxu0 }
 0x1e5   : > { %859 = vst [vmem:[%s1570_s8] sm:$0xff] %v851_v58  ;;  %v1013_v62 = vadd.f32 %v802_v61, %v492_v60  ;;  %v494_v63 = vpop.f32.mrb[3].mxu1  ;;  %v804_v0 = vpop.f32.mrb[3].mxu0 }
 0x1e6   : > { %860 = vst [vmem:[%s1570_s8 + $0x8] sm:$0xff] %v852_v59  ;;  %v1014_v1 = vadd.f32 %v804_v0, %v494_v63 }
 0x1e7   : > { %v853_v2 = vadd.f32 %v1013_v62, %v839_v51 }
 0x1e8   : > { %v854_v4 = vadd.f32 %v1014_v1, %v839_v51  ;;  %v498_v5 = vpop.f32.mrb[4].mxu1  ;;  %v808_v6 = vpop.f32.mrb[4].mxu0 }
 0x1e9   : > { %861 = vst [vmem:[%s1570_s8 + $0x10] sm:$0xff] %v853_v2  ;;  %v1015_v7 = vadd.f32 %v808_v6, %v498_v5  ;;  %v500_v8 = vpop.f32.mrb[5].mxu1  ;;  %v810_v9 = vpop.f32.mrb[5].mxu0 }
 0x1ea   : > { %862 = vst [vmem:[%s1570_s8 + $0x18] sm:$0xff] %v854_v4  ;;  %v1016_v10 = vadd.f32 %v810_v9, %v500_v8 }
 0x1eb   : > { %v855_v11 = vadd.f32 %v1015_v7, %v844_v3 }
 0x1ec   : > { %v856_v12 = vadd.f32 %v1016_v10, %v844_v3  ;;  %v504_v13 = vpop.f32.mrb[6].mxu1  ;;  %v814_v14 = vpop.f32.mrb[6].mxu0 }
 0x1ed   : > { %863 = vst [vmem:[%s1570_s8 + $0x20] sm:$0xff] %v855_v11  ;;  %v1017_v15 = vadd.f32 %v814_v14, %v504_v13  ;;  %v506_v16 = vpop.f32.mrb[7].mxu1  ;;  %v816_v17 = vpop.f32.mrb[7].mxu0 }
 0x1ee   : > { %864 = vst [vmem:[%s1570_s8 + $0x28] sm:$0xff] %v856_v12  ;;  %v1018_v19 = vadd.f32 %v816_v17, %v506_v16 }
 0x1ef   : > { %v857_v20 = vadd.f32 %v1017_v15, %v849_v18 }
 0x1f0   : > { %v858_v21 = vadd.f32 %v1018_v19, %v849_v18 }
 0x1f1   : > { %865 = vst [vmem:[%s1570_s8 + $0x30] sm:$0xff] %v857_v20 }
 0x1f2   : > { %866 = vst [vmem:[%s1570_s8 + $0x38] sm:$0xff] %v858_v21 }
 0x1f3   : > { %1195 = shalt.err (!%p1192_p9)
}
 0x1f4   : > { %s1196_s30 = scalar_lea.hbm %s1586_s9, 1024  ;;  %s1200_s5 = scalar_lea.hbm %s1656_s3, 6144 }
 0x1f5   : > { %p1197_p11 = scmp.ne.s32.totalorder %s1586_s9, %s1196_s30  ;;  %p1201_p4 = scmp.lt.u32.totalorder %s1586_s9, %s1656_s3 }
 0x1f6   : > { %p1202_p5 = scmp.lt.u32.totalorder %s1200_s5, %s1196_s30  ;;  %p1204_p7 = scmp.lt.u32.totalorder %s1196_s30, %s1586_s9 }
 0x1f7   : > { %p1198_p13 = pnand %p1197_p11, %p1672_p12 }
 0x1f8   : > { %p1203_p8 = por %p1202_p5, %p1201_p4 }
 0x1f9   : > { %p1199_p0 = pneg %p1198_p13 }
 0x1fa   : > { %p1205_p2 = por %p1204_p7, %p1203_p8 }
 0x1fc   : > { %p1206_p3 = pnand %p1205_p2, %p1199_p0 }
 0x1fe   : > { %1209 = shalt.err (!%p1206_p3)
}
 0x1ff   : > { %s1313_s18 = smov 256   ;;  %s1314_s19 = smov 768  }
 0x200   : > { %s1315_s28 = smov 16  }
 0x201   : > { %1041 = dma.vmem_to_hbm [thread:$0]  (%p1672_p12), %s1580_s29, 1024, %s1586_s9, %s1592_s23, %s1313_s18, %s1314_s19, %s1315_s28  }
 0x202 PF: > { %p1052_p10 = scmp.ge.s32.totalorder %s1304_s22, 2  ;;  %s898_s10 = sand.u32 1, %s1264_s12  }
 0x203   : > { %p1673_p1 = scmp.ne.s32.totalorder %s1668_s7, 0  ;;  %s899_s26 = scalar_lea.sflag [#allocation4], %s898_s10 }
 0x205   : > { %p1048_p6 = pnand %p1052_p10, %p1673_p1 }
 0x207   : > { %1259 = dma.done.wait (!%p1048_p6), %s899_s26, 1024  }
 0x208   : > { %1261 = vsyncadd (!%p1048_p6), %s899_s26, 4294966272  ;;  %s19_s22 = sadd.s32 1, %s1304_s22   ;;  %s1674_s19 = sld [smem:[#allocation8_spill]] }
 0x209   : > { %p16_p9 = scmp.ge.s32.totalorder %s19_s22, 8   ;;  %s1675_s24 = sld [smem:[#allocation9_spill]] }
 0x20a   : > { %s1676_s21 = sld [smem:[#allocation10_spill]]  ;;  %s1677_s12 = smov %s1268_s13 }
 0x20b   : > { %s1678_s13 = smov %s1272_s14  ;;  %s1679_s14 = smov %s1426_s15 }
 0x20c   : > { %s1680_s15 = smov %s1280_s16  ;;  %s1681_s16 = smov %s1284_s17 }
 0x20d   : > { %s1682_s17 = smov %s1429_s27  ;;  %s1683_s18 = smov %s1296_s20 }
 0x20e   :  { %18 = sbr.rel (!%p16_p9) target bundleno = 9 (0x9), region = 80 }
 0x20f   : > { %s1684_s20 = smov %s1675_s24 }
 0x215   :  { %904 = vsyncpa [#allocation3], 1 }
 0x216   :  { %906 = vsyncpa [#allocation3 + $0x1], 1 }
 0x217   :  { %907 = vsyncpa [#allocation4], 1 }
 0x218   :  { %909 = vsyncpa [#allocation4 + $0x1], 1 }

</bundles_post_ra>
